<compile_context>
chip_gen: v6e
topology: v6e:2x2x1
jax: 0.10.0
libtpu: 0.0.40
codegen_flags: <defaults>
</compile_context>

<pallas_src>
import functools
import math

import jax
import jax.numpy as jnp
from jax.experimental import pallas as pl
from jax.experimental.pallas import tpu as pltpu


def _round_up(x: int, m: int) -> int:
    return (x + m - 1) // m * m


def _img_encoder_kernel(x_ref, w_ref, b_ref, o_ref, *, norm: bool):
    # MXU matmul (f32 accumulate) + bias add + optional row-wise L2 normalize.
    y = jnp.dot(x_ref[...], w_ref[...], preferred_element_type=jnp.float32)
    y = y + b_ref[...].astype(jnp.float32)           # (TB, out_p) + (1, out_p)
    if norm:
        # torch.nn.functional.normalize(y, p=2, dim=1): y / max(||y||_2, 1e-12)
        # == y * rsqrt(max(sum(y*y), 1e-24))  (sqrt is monotone). Padded zero
        # columns add nothing to the sum, so the norm is over real columns only.
        ss = jnp.sum(y * y, axis=1, keepdims=True)
        y = y * jax.lax.rsqrt(jnp.maximum(ss, 1e-24))
    o_ref[...] = y.astype(o_ref.dtype)


def img_encoder_forward(x, weight_t, bias, *, norm: bool, out_dtype=None):
    """x: (B, in_size); weight_t: (in_size, out_size); bias: (out_size,)."""
    B, in_size = x.shape
    out_size = weight_t.shape[1]
    out_dtype = out_dtype if out_dtype is not None else x.dtype

    # --- lane-dense output: zero-pad out_size to a multiple of 128 ------------
    out_p = _round_up(out_size, 128)
    if out_p != out_size:
        weight_t = jnp.pad(weight_t, ((0, 0), (0, out_p - out_size)))
        bias = jnp.pad(bias, (0, out_p - out_size))
    bias2d = bias.reshape(1, out_p)

    # --- batch tiling (parallel grid axis) ------------------------------------
    TB = min(128, _round_up(B, 8))        # modest tiles; 1 vst slot on v5e
    B_p = _round_up(B, TB)
    if B_p != B:
        x = jnp.pad(x, ((0, B_p - B), (0, 0)))

    cost = pl.CostEstimate(
        flops=2 * B_p * in_size * out_p,
        transcendentals=B_p if norm else 0,
        bytes_accessed=(x.size * x.dtype.itemsize
                        + weight_t.size * weight_t.dtype.itemsize
                        + bias2d.size * bias2d.dtype.itemsize
                        + B_p * out_p * jnp.dtype(out_dtype).itemsize),
    )

    kernel = functools.partial(_img_encoder_kernel, norm=norm)
    out = pl.pallas_call(
        kernel,
        out_shape=jax.ShapeDtypeStruct((B_p, out_p), out_dtype),
        grid_spec=pltpu.PrefetchScalarGridSpec(
            num_scalar_prefetch=0,
            grid=(B_p // TB,),
            in_specs=[
                pl.BlockSpec((TB, in_size), lambda i: (i, 0)),        # batch tile
                pl.BlockSpec((in_size, out_p), lambda i: (0, 0)),     # resident W
                pl.BlockSpec((1, out_p), lambda i: (0, 0)),           # resident b
            ],
            out_specs=pl.BlockSpec((TB, out_p), lambda i: (i, 0)),
        ),
        compiler_params=pltpu.CompilerParams(
            dimension_semantics=("parallel",),
        ),
        cost_estimate=cost,
    )(x, weight_t, bias2d)

    return out[:B, :out_size]


if __name__ == "__main__":
    # config: linear.in_size=32, linear.out_size=64, norm=True
    B, in_size, out_size = 8, 32, 64
    norm = True

    key = jax.random.PRNGKey(0)
    k_x, k_w, k_b = jax.random.split(key, 3)

    # Input as produced upstream of the module; squeeze only the singleton axis
    # (plain squeeze() would collapse the batch dim when B == 1).
    x_raw = jax.random.normal(k_x, (B, 1, in_size), dtype=jnp.float32)
    x = jnp.squeeze(x_raw, axis=1)  # (B, in_size) — matches input.squeeze()

    # Deterministic parameter init mirroring the module's __init__:
    # xavier_uniform_ for weight, default nn.Linear uniform for bias.
    xav_bound = math.sqrt(6.0 / (in_size + out_size))
    weight = jax.random.uniform(
        k_w, (out_size, in_size), minval=-xav_bound, maxval=xav_bound,
        dtype=jnp.float32)
    b_bound = 1.0 / math.sqrt(in_size)
    bias = jax.random.uniform(
        k_b, (out_size,), minval=-b_bound, maxval=b_bound, dtype=jnp.float32)

    weight_t = weight.T  # (in_size, out_size) for x @ W^T semantics

    out = img_encoder_forward(x, weight_t, bias, norm=norm)
    out = jax.block_until_ready(out)

    # Reference check in plain JAX.
    ref = x @ weight_t + bias
    if norm:
        ref = ref / jnp.maximum(
            jnp.sqrt(jnp.sum(ref * ref, axis=1, keepdims=True)), 1e-12)
    assert out.shape == (B, out_size)
    assert jnp.allclose(out, ref, atol=1e-5, rtol=1e-5)

    print("KERNEL_OK")
</pallas_src>

<mosaic_0001>
module attributes {stable_mosaic.version = 11 : i64} {
  func.func @_img_encoder_kernel(%arg0: i32, %arg1: memref<8x32xf32, #tpu.memory_space<vmem>>, %arg2: memref<32x128xf32, #tpu.memory_space<vmem>>, %arg3: memref<1x128xf32, #tpu.memory_space<vmem>>, %arg4: memref<8x128xf32, #tpu.memory_space<vmem>>) attributes {dimension_semantics = [#tpu.dimension_semantics<parallel>], iteration_bounds = array<i64: 1>, scalar_prefetch = 0 : i64, scratch_operands = 0 : i64, tpu.core_type = #tpu.core_type<tc>, window_params = [{transform_indices = @transform_0, window_bounds = array<i64: 8, 32>}, {pipeline_mode = #tpu.pipeline_mode<synchronous>, transform_indices = @transform_1, window_bounds = array<i64: 32, 128>}, {pipeline_mode = #tpu.pipeline_mode<synchronous>, transform_indices = @transform_2, window_bounds = array<i64: 1, 128>}, {transform_indices = @transform_3, window_bounds = array<i64: 8, 128>}]} {
    %c0 = arith.constant 0 : index
    %c0_0 = arith.constant 0 : index
    %0 = vector.load %arg1[%c0, %c0_0] : memref<8x32xf32, #tpu.memory_space<vmem>>, vector<8x32xf32>
    %c0_1 = arith.constant 0 : index
    %c0_2 = arith.constant 0 : index
    %1 = vector.load %arg2[%c0_1, %c0_2] : memref<32x128xf32, #tpu.memory_space<vmem>>, vector<32x128xf32>
    %cst = arith.constant dense<0.000000e+00> : vector<8x128xf32>
    %2 = tpu.matmul %0, %1, %cst {dimension_numbers = #tpu.dot_dimension_numbers<[1], [0], [0], [1], [0, 0, 1, 1], [], []>} : vector<8x32xf32>, vector<32x128xf32>, vector<8x128xf32> -> vector<8x128xf32>
    %c0_3 = arith.constant 0 : index
    %c0_4 = arith.constant 0 : index
    %3 = vector.load %arg3[%c0_3, %c0_4] : memref<1x128xf32, #tpu.memory_space<vmem>>, vector<1x128xf32>
    %4 = vector.broadcast %3 : vector<1x128xf32> to vector<8x128xf32>
    %5 = arith.addf %2, %4 : vector<8x128xf32>
    %6 = arith.mulf %5, %5 : vector<8x128xf32>
    %cst_5 = arith.constant dense<0.000000e+00> : vector<8xf32>
    %7 = vector.multi_reduction <add>, %6, %cst_5 [1] : vector<8x128xf32> to vector<8xf32>
    %8 = vector.shape_cast %7 : vector<8xf32> to vector<8x1xf32>
    %cst_6 = arith.constant 1.000000e-24 : f32
    %9 = vector.broadcast %cst_6 : f32 to vector<8x1xf32>
    %10 = arith.maximumf %8, %9 : vector<8x1xf32>
    %11 = math.rsqrt %10 : vector<8x1xf32>
    %12 = vector.broadcast %11 : vector<8x1xf32> to vector<8x128xf32>
    %13 = arith.mulf %5, %12 : vector<8x128xf32>
    %c0_7 = arith.constant 0 : index
    %c0_8 = arith.constant 0 : index
    %14 = vector.load %arg4[%c0_7, %c0_8] : memref<8x128xf32, #tpu.memory_space<vmem>>, vector<8x128xf32>
    tpu.vector_store %arg4[%c0_7, %c0_8], %13 {strides = array<i32>} : memref<8x128xf32, #tpu.memory_space<vmem>>, vector<8x128xf32>,
    return
  }
  func.func @transform_0(%arg0: i32) -> (i32, i32) {
    %c0_i32 = arith.constant 0 : i32
    %c0_i32_0 = arith.constant 0 : i32
    return %arg0, %c0_i32 : i32, i32
  }
  func.func @transform_1(%arg0: i32) -> (i32, i32) {
    %c0_i32 = arith.constant 0 : i32
    %c0_i32_0 = arith.constant 0 : i32
    %c0_i32_1 = arith.constant 0 : i32
    return %c0_i32, %c0_i32_0 : i32, i32
  }
  func.func @transform_2(%arg0: i32) -> (i32, i32) {
    %c0_i32 = arith.constant 0 : i32
    %c0_i32_0 = arith.constant 0 : i32
    %c0_i32_1 = arith.constant 0 : i32
    return %c0_i32, %c0_i32_0 : i32, i32
  }
  func.func @transform_3(%arg0: i32) -> (i32, i32) {
    %c0_i32 = arith.constant 0 : i32
    %c0_i32_0 = arith.constant 0 : i32
    return %arg0, %c0_i32 : i32, i32
  }
}

</mosaic_0001>

<bundles_post_ra>
// kernel: tpu_custom_call.1
= control target key start
LH: loop header
LB: loop body
LE: loop exit
PB: predicated region body
PF: predicated region fallthrough
CT: control target
= control target key end

     0   :  { %8 = vsyncpa [#allocation3], 0  ;;  %s282_s0 = inlined_call_operand.hbm [shape: f32[8,32], index: 0, kind: input, shape index: {}]   ;;  %s283_s1 = inlined_call_operand.hbm [shape: f32[32,128], index: 1, kind: input, shape index: {}]   ;;  %s284_s2 = inlined_call_operand.vmem [shape: f32[1,128], index: 2, kind: input, shape index: {}]   ;;  %s285_s3 = inlined_call_operand.hbm [shape: f32[8,128], index: 3, kind: output, shape index: {}]  }
   0x1   :  { %9 = vsyncpa [#allocation6], 0 }
   0x2   :  { %10 = vsyncpa [#allocation4], 0  ;;  %s243_s12 = smov [#allocation2]   ;;  %s244_s14 = smov [#allocation5]  }
   0x3   :  { %s17_s13 = sshll.u32 %s243_s12, 4  ;;  %s26_s15 = sshll.u32 %s244_s14, 4  ;;  %s18_s13 = int_to_ptr.vmem [resolvable:$true] %s17_s13  ;;  %s27_s15 = int_to_ptr.vmem [resolvable:$true] %s26_s15 }
   0x4   :  { %s185_s16 = scalar_lea.vmem %s18_s13, 128  ;;  %p190_p1 = scmp.lt.s32.totalorder %s18_s13, %s18_s13 }
   0x5   :  { %p186_p0 = scmp.ne.s32.totalorder %s18_s13, %s185_s16  ;;  %p191_p2 = scmp.lt.s32.totalorder %s185_s16, %s185_s16 }
   0x7   :  { %p192_p3 = por %p191_p2, %p190_p1 }
   0x9   :  { %p193_p4 = pnand %p192_p3, %p186_p0 }
   0xb   :  { %196 = shalt.err (!%p193_p4)
}
   0xc   :  { %20 = dma.hbm_to_vmem [thread:$0]  %s282_s0, 128, %s18_s13, [#allocation3]  }
   0xd   :  { %s205_s19 = scalar_lea.vmem %s27_s15, 512  ;;  %p210_p6 = scmp.lt.s32.totalorder %s27_s15, %s27_s15 }
   0xe   :  { %p206_p5 = scmp.ne.s32.totalorder %s27_s15, %s205_s19  ;;  %p211_p7 = scmp.lt.s32.totalorder %s205_s19, %s205_s19 }
  0x10   :  { %p212_p8 = por %p211_p7, %p210_p6 }
  0x12   :  { %p213_p9 = pnand %p212_p8, %p206_p5 }
  0x14   :  { %216 = shalt.err (!%p213_p9)
}
  0x15   :  { %s245_s20 = smov 128   ;;  %s246_s21 = smov 8  }
  0x16   :  { %32 = dma.hbm_to_vmem [thread:$0]  %s283_s1, 512, %s27_s15, [#allocation6], %s245_s20, %s245_s20, %s246_s21  }
  0x17   :  { %237 = dma.done.wait [#allocation3], 128  }
  0x18   :  { %238 = vsyncadd [#allocation3], 4294967168 }
  0x19   :  { %239 = dma.done.wait [#allocation6], 512  }
  0x1a   :  { %240 = vsyncadd [#allocation6], 4294966784  ;;  %v247_v0 = vmov 0.0   ;;  %vm248_vm0 = vmmov 0   ;;  %v45_v1 = vld [vmem:[#allocation5 + $0x18] sm:$0xff]  ;;  %v44_v2 = vld [vmem:[#allocation5 + $0x10] sm:$0xff] }
  0x1b   :  { %157 = vmatprep.subr.mxu0 %v247_v0  ;;  %165 = vmatprep.mubr.msk.f32.mxu0 %vm248_vm0, %v247_v0  ;;  %v43_v3 = vld [vmem:[#allocation5 + $0x8] sm:$0xff]  ;;  %v42_v4 = vld [vmem:[#allocation5] sm:$0xff]  ;;  %v41_v5 = vld [vmem:[#allocation2] sm:$0xff]  ;;  %vm53_vm1 = vcmask 261120   ;;  %s249_s24 = smov [#allocation7]  }
  0x1c   :  { %158 = vmatpush3.msra.mxu0 %v45_v1  ;;  %v150_v6 = vld [vmem:[%s284_s2] ss:$0 sm:$0xff]  ;;  %s140_s25 = sshll.u32 %s249_s24, 4  ;;  %s141_s25 = int_to_ptr.vmem [resolvable:$true] %s140_s25 }
  0x1d   :  { %159 = vmatprep.subr.mxu0 %v247_v0  ;;  %s217_s26 = scalar_lea.vmem %s141_s25, 128  ;;  %p222_p11 = scmp.lt.s32.totalorder %s141_s25, %s141_s25 }
  0x1e   :  { %160 = vmatpush3.msra.mxu0 %v44_v2  ;;  %p218_p10 = scmp.ne.s32.totalorder %s141_s25, %s217_s26  ;;  %p223_p12 = scmp.lt.s32.totalorder %s217_s26, %s217_s26 }
  0x1f   :  { %161 = vmatprep.subr.mxu0 %v247_v0 }
  0x20   :  { %162 = vmatpush3.msra.mxu0 %v43_v3  ;;  %p224_p13 = por %p223_p12, %p222_p11 }
  0x21   :  { %163 = vmatprep.subr.mxu0 %v247_v0 }
  0x22   :  { %164 = vmatpush3.msra.mxu0 %v42_v4  ;;  %p225_p0 = pnand %p224_p13, %p218_p10 }
  0x23   :  { %166 = vmatmul.mubr.msk.f32.vlgmr.msra.gmra.mxu0 %vm53_vm1, %v41_v5 }
  0xe3   :  { %v123_v7 = vpop.f32.mrf.mxu0 }
  0xe4   :  { %v124_v8 = vadd.f32 %v150_v6, %v123_v7 }
  0xe5   :  { %v167_v9 = vpop.f32.mrf.mxu0 }
  0xe6   :  { %v127_v10 = vmul.f32 %v124_v8, %v124_v8 }
  0xe8   :  { %128 = vadd.xlane.f32.xlu0 %v127_v10 }
 0x171   :  { %v129_v11 = vpop.xlane.xlu0 %128 }
 0x172   :  { %v130_v12 = vmax.f32 %v129_v11, 1e-24 }
 0x174   :  { %175 = vrsqrt.f32 %v130_v12 }
 0x181   :  { %v176_v13 = vpop.eup %175 }
 0x182   :  { %v132_v14 = vmul.f32 %v176_v13, %v124_v8 }
 0x184   :  { %133 = vst [vmem:[#allocation7] sm:$0xff] %v132_v14 }
 0x185   :  { %228 = shalt.err (!%p225_p0)
}
 0x186   :  { %143 = dma.vmem_to_hbm [thread:$0]  %s141_s25, 128, %s285_s3, [#allocation4]  }
 0x187   :  { %241 = dma.done.wait [#allocation4], 128  }
 0x188   :  { %242 = vsyncadd [#allocation4], 4294967168 }
 0x189   :  { %147 = vsyncpa [#allocation3], 1 }
 0x18a   :  { %148 = vsyncpa [#allocation6], 1 }
 0x18b   :  { %149 = vsyncpa [#allocation4], 1 }

</bundles_post_ra>
